<compile_context>
chip_gen: v6e
topology: v6e:2x2x1
jax: 0.10.0
libtpu: 0.0.40
codegen_flags: <defaults>
</compile_context>

<pallas_src>
import jax
import jax.numpy as jnp
from jax.experimental import pallas as pl
from jax.experimental.pallas import tpu as pltpu

# ---- config (mirrors CONFIG / module __init__) -----------------------------
CDE_FUNC_CHANNELS = 128   # CONFIG['cde_func_channels']
DEPTH             = 3     # CONFIG['cde_func_depth']
HIDDEN_CHANNELS   = 32    # small-shape stand-in for hidden_channels
INPUT_CHANNELS    = 4     # small-shape stand-in for input_channels (H*I = 128, lane-dense)
BATCH             = 256


def _tensorcores_per_chip():
    """1 TC/chip on v5e/v6e, 2 TCs (megacore / dual-TC) on v4/v5p/v7x.
    Checked once at import; never probed per call."""
    try:
        kind = jax.devices()[0].device_kind.lower()
    except Exception:
        return 1
    return 2 if any(tag in kind for tag in ("v4", "v5p", "v7")) else 1


_NUM_TC = _tensorcores_per_chip()


# ---- kernel -----------------------------------------------------------------
def cde_func_kernel(z_ref, w1_ref, wh_ref, bh_ref, wo_ref, bo_ref, out_ref):
    """Fused MLP: Linear+Tanh (f32), (depth-1) x Linear+Tanh (bf16 in / f32 acc),
    final Linear (bf16 in / f32 acc). Bias-add and tanh always in f32."""
    # Layer 1 fully f32: K = hidden_channels is tiny, accuracy is free here.
    h = jnp.tanh(
        jnp.dot(z_ref[...], w1_ref[...], preferred_element_type=jnp.float32)
        + bh_ref[0:1, :]
    )
    # Hidden layers (static unroll over the stacked (depth-1, C, C) weights).
    for l in range(wh_ref.shape[0]):
        h = jnp.tanh(
            jnp.dot(h.astype(jnp.bfloat16), wh_ref[l],
                    preferred_element_type=jnp.float32)
            + bh_ref[l + 1:l + 2, :]
        )
    # Output layer.
    y = jnp.dot(h.astype(jnp.bfloat16), wo_ref[...],
                preferred_element_type=jnp.float32) + bo_ref[...]
    out_ref[...] = y.astype(out_ref.dtype)


# ---- one-time parameter packing (hoisted out of the per-eval call path) -----
def prepare_params(params):
    """Pack CDEFunc Linear params into kernel-ready arrays.  Called ONCE.
    params: tuple of (w, b), w stored (in_features, out_features), f32.
    Returns (w1 f32 (H,C), wh bf16 (depth-1,C,C), bh f32 (depth,C),
             wo bf16 (C,H*I), bo f32 (1,H*I))."""
    ws = [w for (w, _) in params]
    bs = [jnp.reshape(b, (1, -1)).astype(jnp.float32) for (_, b) in params]
    w1 = ws[0].astype(jnp.float32)
    wh = jnp.stack([w.astype(jnp.bfloat16) for w in ws[1:-1]], axis=0)
    bh = jnp.concatenate(bs[:-1], axis=0)
    wo = ws[-1].astype(jnp.bfloat16)
    bo = bs[-1]
    return (w1, wh, bh, wo, bo)


# ---- wrapper -----------------------------------------------------------------
def cde_func_pallas(z, prepared, t=None, *, batch_tile=None):
    """z: (B, H) float32, prepared = prepare_params(params).
    Returns (B, H, I) float32 — same semantics as CDEFunc.forward.
    `t` is accepted for interface parity with the PyTorch module but unused.
    No device sync inside: safe to call back-to-back in a solver loop."""
    del t
    w1, wh, bh, wo, bo = prepared
    B, H = z.shape
    C = w1.shape[1]
    HI = wo.shape[1]                  # = H * I
    I = HI // H
    n_hidden = wh.shape[0]            # depth - 1
    depth = n_hidden + 1

    if batch_tile is None:
        # 1 TC/chip: single grid step (no per-step overhead, biggest M).
        # 2 TC/chip: exactly one step per core, sharded via "parallel".
        batch_tile = B if _NUM_TC <= 1 else max(B // _NUM_TC, 8)
    assert B % batch_tile == 0, "batch must be a multiple of the batch tile"
    grid = (B // batch_tile,)

    def inv_spec(shape):
        # Grid-invariant full-array block: same block index every step, so the
        # pipeline never re-DMAs it (default buffering; no pipeline_mode probe).
        return pl.BlockSpec(shape, lambda i, _n=len(shape): (0,) * _n)

    out = pl.pallas_call(
        cde_func_kernel,
        out_shape=jax.ShapeDtypeStruct((B, HI), jnp.float32),
        grid_spec=pltpu.PrefetchScalarGridSpec(
            num_scalar_prefetch=0,
            grid=grid,
            in_specs=[
                pl.BlockSpec((batch_tile, H), lambda i: (i, 0)),   # z tile (grid-varying)
                inv_spec((H, C)),                                  # layer-1 weight (f32)
                inv_spec((n_hidden, C, C)),                        # stacked hidden weights (bf16)
                inv_spec((depth, C)),                              # stacked biases 1..depth (f32)
                inv_spec((C, HI)),                                 # output weight (bf16)
                inv_spec((1, HI)),                                 # output bias (f32)
            ],
            out_specs=pl.BlockSpec((batch_tile, HI), lambda i: (i, 0)),
        ),
        compiler_params=pltpu.CompilerParams(
            dimension_semantics=("parallel",)),   # independent batch steps
    )(z, w1, wh, bh, wo, bo)

    return out.reshape(B, H, I)       # .view(-1, hidden, input) — metadata only


# ---- synthetic init + pure-JAX reference ------------------------------------
def init_params(key, input_channels, hidden_channels, depth):
    """Deterministic synthetic init matching the Linear shapes of CDEFunc.__init__.
    Stored as (in_features, out_features). Uniform(-1/sqrt(fan_in), 1/sqrt(fan_in))."""
    C = CDE_FUNC_CHANNELS
    dims = [(hidden_channels, C)]
    for _ in range(depth - 1):
        dims.append((C, C))
    dims.append((C, input_channels * hidden_channels))

    params = []
    for (fan_in, fan_out) in dims:
        key, kw, kb = jax.random.split(key, 3)
        bound = 1.0 / jnp.sqrt(jnp.float32(fan_in))
        w = jax.random.uniform(kw, (fan_in, fan_out), jnp.float32, -bound, bound)
        b = jax.random.uniform(kb, (1, fan_out), jnp.float32, -bound, bound)
        params.append((w, b))
    return tuple(params)   # depth=3 -> 4 linear layers (1 input + 2 hidden + output)


def cde_func_reference(z, params):
    """Pure-JAX f32 reference (original module semantics)."""
    (w1, b1), (w2, b2), (w3, b3), (w4, b4) = params
    h = jnp.tanh(z @ w1 + b1)
    h = jnp.tanh(h @ w2 + b2)
    h = jnp.tanh(h @ w3 + b3)
    y = h @ w4 + b4
    return y.reshape(z.shape[0], HIDDEN_CHANNELS, INPUT_CHANNELS)


if __name__ == "__main__":
    key = jax.random.PRNGKey(0)
    key, kz = jax.random.split(key)

    params = init_params(key, INPUT_CHANNELS, HIDDEN_CHANNELS, DEPTH)
    z = jax.random.normal(kz, (BATCH, HIDDEN_CHANNELS), jnp.float32)

    # One-time: pack + bf16-cast the weights (hoisted out of the per-eval path),
    # and jit the wrapper so repeated solver-loop calls hit a cached executable.
    prepared = prepare_params(params)
    cde_func = jax.jit(cde_func_pallas)

    out = cde_func(z, prepared)
    out = jax.block_until_ready(out)   # single sync for the demo only

    ref = cde_func_reference(z, params)
    assert out.shape == (BATCH, HIDDEN_CHANNELS, INPUT_CHANNELS)
    # Layers 2..4 use bf16 matmul inputs with f32 accumulation (layer 1 is pure
    # f32), so the error vs. the f32 reference is small; tolerance kept relaxed.
    assert jnp.allclose(out, ref, atol=5e-2, rtol=5e-2), float(
        jnp.max(jnp.abs(out - ref)))

    print("KERNEL_OK")
</pallas_src>

<mosaic_0001>
module attributes {stable_mosaic.version = 11 : i64} {
  func.func @cde_func_kernel(%arg0: i32, %arg1: memref<256x32xf32, #tpu.memory_space<vmem>>, %arg2: memref<32x128xf32, #tpu.memory_space<vmem>>, %arg3: memref<2x128x128xbf16, #tpu.memory_space<vmem>>, %arg4: memref<3x128xf32, #tpu.memory_space<vmem>>, %arg5: memref<128x128xbf16, #tpu.memory_space<vmem>>, %arg6: memref<1x128xf32, #tpu.memory_space<vmem>>, %arg7: memref<256x128xf32, #tpu.memory_space<vmem>>) attributes {dimension_semantics = [#tpu.dimension_semantics<parallel>], iteration_bounds = array<i64: 1>, scalar_prefetch = 0 : i64, scratch_operands = 0 : i64, tpu.core_type = #tpu.core_type<tc>, window_params = [{transform_indices = @transform_0, window_bounds = array<i64: 256, 32>}, {pipeline_mode = #tpu.pipeline_mode<synchronous>, transform_indices = @transform_1, window_bounds = array<i64: 32, 128>}, {pipeline_mode = #tpu.pipeline_mode<synchronous>, transform_indices = @transform_2, window_bounds = array<i64: 2, 128, 128>}, {pipeline_mode = #tpu.pipeline_mode<synchronous>, transform_indices = @transform_3, window_bounds = array<i64: 3, 128>}, {pipeline_mode = #tpu.pipeline_mode<synchronous>, transform_indices = @transform_4, window_bounds = array<i64: 128, 128>}, {pipeline_mode = #tpu.pipeline_mode<synchronous>, transform_indices = @transform_5, window_bounds = array<i64: 1, 128>}, {transform_indices = @transform_6, window_bounds = array<i64: 256, 128>}]} {
    %c0 = arith.constant 0 : index
    %c0_0 = arith.constant 0 : index
    %0 = vector.load %arg1[%c0, %c0_0] : memref<256x32xf32, #tpu.memory_space<vmem>>, vector<256x32xf32>
    %c0_1 = arith.constant 0 : index
    %c0_2 = arith.constant 0 : index
    %1 = vector.load %arg2[%c0_1, %c0_2] : memref<32x128xf32, #tpu.memory_space<vmem>>, vector<32x128xf32>
    %cst = arith.constant dense<0.000000e+00> : vector<256x128xf32>
    %2 = tpu.matmul %0, %1, %cst {dimension_numbers = #tpu.dot_dimension_numbers<[1], [0], [0], [1], [0, 0, 1, 1], [], []>} : vector<256x32xf32>, vector<32x128xf32>, vector<256x128xf32> -> vector<256x128xf32>
    %c0_3 = arith.constant 0 : index
    %c0_4 = arith.constant 0 : index
    %3 = vector.load %arg4[%c0_3, %c0_4] : memref<3x128xf32, #tpu.memory_space<vmem>>, vector<1x128xf32>
    %4 = vector.broadcast %3 : vector<1x128xf32> to vector<256x128xf32>
    %5 = arith.addf %2, %4 : vector<256x128xf32>
    %6 = math.tanh %5 : vector<256x128xf32>
    %7 = arith.truncf %6 : vector<256x128xf32> to vector<256x128xbf16>
    %c0_5 = arith.constant 0 : index
    %c0_6 = arith.constant 0 : index
    %c0_7 = arith.constant 0 : index
    %8 = vector.load %arg3[%c0_5, %c0_6, %c0_7] : memref<2x128x128xbf16, #tpu.memory_space<vmem>>, vector<1x128x128xbf16>
    %9 = vector.shape_cast %8 : vector<1x128x128xbf16> to vector<128x128xbf16>
    %cst_8 = arith.constant dense<0.000000e+00> : vector<256x128xf32>
    %10 = tpu.matmul %7, %9, %cst_8 {dimension_numbers = #tpu.dot_dimension_numbers<[1], [0], [0], [1], [0, 0, 1, 1], [], []>} : vector<256x128xbf16>, vector<128x128xbf16>, vector<256x128xf32> -> vector<256x128xf32>
    %c1 = arith.constant 1 : index
    %c0_9 = arith.constant 0 : index
    %11 = vector.load %arg4[%c1, %c0_9] : memref<3x128xf32, #tpu.memory_space<vmem>>, vector<1x128xf32>
    %12 = vector.broadcast %11 : vector<1x128xf32> to vector<256x128xf32>
    %13 = arith.addf %10, %12 : vector<256x128xf32>
    %14 = math.tanh %13 : vector<256x128xf32>
    %15 = arith.truncf %14 : vector<256x128xf32> to vector<256x128xbf16>
    %c1_10 = arith.constant 1 : index
    %c0_11 = arith.constant 0 : index
    %c0_12 = arith.constant 0 : index
    %16 = vector.load %arg3[%c1_10, %c0_11, %c0_12] : memref<2x128x128xbf16, #tpu.memory_space<vmem>>, vector<1x128x128xbf16>
    %17 = vector.shape_cast %16 : vector<1x128x128xbf16> to vector<128x128xbf16>
    %cst_13 = arith.constant dense<0.000000e+00> : vector<256x128xf32>
    %18 = tpu.matmul %15, %17, %cst_13 {dimension_numbers = #tpu.dot_dimension_numbers<[1], [0], [0], [1], [0, 0, 1, 1], [], []>} : vector<256x128xbf16>, vector<128x128xbf16>, vector<256x128xf32> -> vector<256x128xf32>
    %c2 = arith.constant 2 : index
    %c0_14 = arith.constant 0 : index
    %19 = vector.load %arg4[%c2, %c0_14] : memref<3x128xf32, #tpu.memory_space<vmem>>, vector<1x128xf32>
    %20 = vector.broadcast %19 : vector<1x128xf32> to vector<256x128xf32>
    %21 = arith.addf %18, %20 : vector<256x128xf32>
    %22 = math.tanh %21 : vector<256x128xf32>
    %23 = arith.truncf %22 : vector<256x128xf32> to vector<256x128xbf16>
    %c0_15 = arith.constant 0 : index
    %c0_16 = arith.constant 0 : index
    %24 = vector.load %arg5[%c0_15, %c0_16] : memref<128x128xbf16, #tpu.memory_space<vmem>>, vector<128x128xbf16>
    %cst_17 = arith.constant dense<0.000000e+00> : vector<256x128xf32>
    %25 = tpu.matmul %23, %24, %cst_17 {dimension_numbers = #tpu.dot_dimension_numbers<[1], [0], [0], [1], [0, 0, 1, 1], [], []>} : vector<256x128xbf16>, vector<128x128xbf16>, vector<256x128xf32> -> vector<256x128xf32>
    %c0_18 = arith.constant 0 : index
    %c0_19 = arith.constant 0 : index
    %26 = vector.load %arg6[%c0_18, %c0_19] : memref<1x128xf32, #tpu.memory_space<vmem>>, vector<1x128xf32>
    %27 = vector.broadcast %26 : vector<1x128xf32> to vector<256x128xf32>
    %28 = arith.addf %25, %27 : vector<256x128xf32>
    %c0_20 = arith.constant 0 : index
    %c0_21 = arith.constant 0 : index
    %29 = vector.load %arg7[%c0_20, %c0_21] : memref<256x128xf32, #tpu.memory_space<vmem>>, vector<256x128xf32>
    tpu.vector_store %arg7[%c0_20, %c0_21], %28 {strides = array<i32>} : memref<256x128xf32, #tpu.memory_space<vmem>>, vector<256x128xf32>,
    return
  }
  func.func @transform_0(%arg0: i32) -> (i32, i32) {
    %c0_i32 = arith.constant 0 : i32
    %c0_i32_0 = arith.constant 0 : i32
    return %arg0, %c0_i32 : i32, i32
  }
  func.func @transform_1(%arg0: i32) -> (i32, i32) {
    %c0_i32 = arith.constant 0 : i32
    %c0_i32_0 = arith.constant 0 : i32
    %c0_i32_1 = arith.constant 0 : i32
    return %c0_i32, %c0_i32_0 : i32, i32
  }
  func.func @transform_2(%arg0: i32) -> (i32, i32, i32) {
    %c0_i32 = arith.constant 0 : i32
    %c0_i32_0 = arith.constant 0 : i32
    %c0_i32_1 = arith.constant 0 : i32
    %c0_i32_2 = arith.constant 0 : i32
    return %c0_i32, %c0_i32_0, %c0_i32_1 : i32, i32, i32
  }
  func.func @transform_3(%arg0: i32) -> (i32, i32) {
    %c0_i32 = arith.constant 0 : i32
    %c0_i32_0 = arith.constant 0 : i32
    %c0_i32_1 = arith.constant 0 : i32
    return %c0_i32, %c0_i32_0 : i32, i32
  }
  func.func @transform_4(%arg0: i32) -> (i32, i32) {
    %c0_i32 = arith.constant 0 : i32
    %c0_i32_0 = arith.constant 0 : i32
    %c0_i32_1 = arith.constant 0 : i32
    return %c0_i32, %c0_i32_0 : i32, i32
  }
  func.func @transform_5(%arg0: i32) -> (i32, i32) {
    %c0_i32 = arith.constant 0 : i32
    %c0_i32_0 = arith.constant 0 : i32
    %c0_i32_1 = arith.constant 0 : i32
    return %c0_i32, %c0_i32_0 : i32, i32
  }
  func.func @transform_6(%arg0: i32) -> (i32, i32) {
    %c0_i32 = arith.constant 0 : i32
    %c0_i32_0 = arith.constant 0 : i32
    return %arg0, %c0_i32 : i32, i32
  }
}

</mosaic_0001>

<bundles_post_ra>
// kernel: cde_func_pallas.1
= control target key start
LH: loop header
LB: loop body
LE: loop exit
PB: predicated region body
PF: predicated region fallthrough
CT: control target
= control target key end

     0   :  { %vm65_vm0 = vcmask 261120   ;;  %s2385_s1 = inlined_call_operand.vmem [shape: f32[32,128], index: 1, kind: input, shape index: {}]   ;;  %s2386_s0 = inlined_call_operand.vmem [shape: f32[256,32], index: 0, kind: input, shape index: {}]   ;;  %s2387_s2 = inlined_call_operand.vmem [shape: bf16[2,128,128], index: 2, kind: input, shape index: {}]   ;;  %s2388_s3 = inlined_call_operand.vmem [shape: f32[3,128], index: 3, kind: input, shape index: {}]   ;;  %s2389_s4 = inlined_call_operand.vmem [shape: bf16[128,128], index: 4, kind: input, shape index: {}]   ;;  %s2390_s5 = inlined_call_operand.vmem [shape: f32[1,128], index: 5, kind: input, shape index: {}]   ;;  %s2391_s6 = inlined_call_operand.vmem [shape: f32[256,128], index: 6, kind: output, shape index: {}]  }
   0x1   :  { %v59_v0 = vld [vmem:[%s2385_s1 + $0x18] sm:$0xff]  ;;  %v58_v1 = vld [vmem:[%s2385_s1 + $0x10] sm:$0xff]  ;;  %v24_v2 = vld [vmem:[%s2386_s0] sm:$0xff] }
   0x2   :  { %1444 = vmatprep.subr.mxu0 %v59_v0  ;;  %v57_v3 = vld [vmem:[%s2385_s1 + $0x8] sm:$0xff]  ;;  %1452 = vmatprep.mubr.msk.f32.mxu0 %vm65_vm0, %v24_v2  ;;  %v56_v4 = vld [vmem:[%s2385_s1] sm:$0xff]  ;;  %v26_v6 = vld [vmem:[%s2386_s0 + $0x10] sm:$0xff] }
   0x3   :  { %1445 = vmatpush3.msra.mxu0 %v59_v0  ;;  %v25_v5 = vld [vmem:[%s2386_s0 + $0x8] sm:$0xff]  ;;  %v27_v7 = vld [vmem:[%s2386_s0 + $0x18] sm:$0xff]  ;;  %v28_v8 = vld [vmem:[%s2386_s0 + $0x20] sm:$0xff] }
   0x4   :  { %1446 = vmatprep.subr.mxu0 %v58_v1  ;;  %v29_v9 = vld [vmem:[%s2386_s0 + $0x28] sm:$0xff]  ;;  %v1660_v10 = vld [vmem:[%s2387_s2 + $0x38] sm:$0xff]   ;;  %v30_v11 = vld [vmem:[%s2386_s0 + $0x30] sm:$0xff] }
   0x5   :  { %1447 = vmatpush3.msra.mxu0 %v58_v1  ;;  %v1661_v12 = vld [vmem:[%s2387_s2 + $0x30] sm:$0xff]   ;;  %1500 = vmatprep.subr.bf16.mxu1 %v1660_v10  ;;  %v31_v13 = vld [vmem:[%s2386_s0 + $0x38] sm:$0xff]  ;;  %v32_v14 = vld [vmem:[%s2386_s0 + $0x40] sm:$0xff] }
   0x6   :  { %1448 = vmatprep.subr.mxu0 %v57_v3  ;;  %1501 = vmatpush3.bf16.msra.mxu1 %v1660_v10  ;;  %v33_v15 = vld [vmem:[%s2386_s0 + $0x48] sm:$0xff]  ;;  %v34_v16 = vld [vmem:[%s2386_s0 + $0x50] sm:$0xff]  ;;  %v35_v17 = vld [vmem:[%s2386_s0 + $0x58] sm:$0xff] }
   0x7   :  { %1449 = vmatpush3.msra.mxu0 %v57_v3  ;;  %1502 = vmatprep.subr.bf16.mxu1 %v1661_v12  ;;  %v36_v18 = vld [vmem:[%s2386_s0 + $0x60] sm:$0xff]  ;;  %v37_v19 = vld [vmem:[%s2386_s0 + $0x68] sm:$0xff]  ;;  %v38_v20 = vld [vmem:[%s2386_s0 + $0x70] sm:$0xff] }
   0x8   :  { %1450 = vmatprep.subr.mxu0 %v56_v4  ;;  %v39_v21 = vld [vmem:[%s2386_s0 + $0x78] sm:$0xff]  ;;  %v40_v22 = vld [vmem:[%s2386_s0 + $0x80] sm:$0xff]  ;;  %v41_v23 = vld [vmem:[%s2386_s0 + $0x88] sm:$0xff] }
   0x9   :  { %1451 = vmatpush3.msra.mxu0 %v56_v4  ;;  %v42_v24 = vld [vmem:[%s2386_s0 + $0x90] sm:$0xff]  ;;  %v43_v25 = vld [vmem:[%s2386_s0 + $0x98] sm:$0xff]  ;;  %v44_v26 = vld [vmem:[%s2386_s0 + $0xa0] sm:$0xff] }
   0xa   :  { %1453 = vmatmul.mubr.msk.f32.vlgmr.msra.gmra.mxu0 %vm65_vm0, %v25_v5  ;;  %1503 = vmatpush3.bf16.msra.mxu1 %v1661_v12  ;;  %v45_v27 = vld [vmem:[%s2386_s0 + $0xa8] sm:$0xff]  ;;  %v46_v28 = vld [vmem:[%s2386_s0 + $0xb0] sm:$0xff]  ;;  %v47_v29 = vld [vmem:[%s2386_s0 + $0xb8] sm:$0xff] }
   0xb   :  { %1455 = vmatprep.mubr.msk.f32.mxu0 %vm65_vm0, %v26_v6  ;;  %v48_v30 = vld [vmem:[%s2386_s0 + $0xc0] sm:$0xff]  ;;  %v49_v31 = vld [vmem:[%s2386_s0 + $0xc8] sm:$0xff]  ;;  %v50_v32 = vld [vmem:[%s2386_s0 + $0xd0] sm:$0xff] }
   0xc   :  { %v51_v33 = vld [vmem:[%s2386_s0 + $0xd8] sm:$0xff]  ;;  %v52_v34 = vld [vmem:[%s2386_s0 + $0xe0] sm:$0xff]  ;;  %v53_v35 = vld [vmem:[%s2386_s0 + $0xe8] sm:$0xff] }
   0xd   :  { %v54_v36 = vld [vmem:[%s2386_s0 + $0xf0] sm:$0xff]  ;;  %v55_v37 = vld [vmem:[%s2386_s0 + $0xf8] sm:$0xff]  ;;  %v1662_v38 = vld [vmem:[%s2387_s2 + $0x28] sm:$0xff]  }
   0xe   :  { %1456 = vmatmul.mubr.msk.f32.gmra.mxu0 %vm65_vm0, %v27_v7  ;;  %1504 = vmatprep.subr.bf16.mxu1 %v1662_v38  ;;  %v1663_v39 = vld [vmem:[%s2387_s2 + $0x20] sm:$0xff]   ;;  %v1664_v40 = vld [vmem:[%s2387_s2 + $0x18] sm:$0xff]   ;;  %v1665_v41 = vld [vmem:[%s2387_s2 + $0x10] sm:$0xff]  }
   0xf   :  { %1458 = vmatprep.mubr.msk.f32.mxu0 %vm65_vm0, %v28_v8  ;;  %1505 = vmatpush3.bf16.msra.mxu1 %v1662_v38  ;;  %v1666_v42 = vld [vmem:[%s2387_s2 + $0x8] sm:$0xff]   ;;  %v1667_v43 = vld [vmem:[%s2387_s2] sm:$0xff]   ;;  %v1668_v44 = vld [vmem:[%s2387_s2 + $0x78] sm:$0xff]  }
  0x10   :  { %1506 = vmatprep.subr.bf16.mxu1 %v1663_v39  ;;  %v1669_v45 = vld [vmem:[%s2387_s2 + $0x70] sm:$0xff]   ;;  %1548 = vmatprep.subr.bf16.mxu0 %v1668_v44  ;;  %v1670_v46 = vld [vmem:[%s2387_s2 + $0x68] sm:$0xff]   ;;  %v1671_v47 = vld [vmem:[%s2387_s2 + $0x60] sm:$0xff]  }
  0x11   :  { %1549 = vmatpush3.bf16.msra.mxu0 %v1668_v44  ;;  %v1672_v48 = vld [vmem:[%s2387_s2 + $0x58] sm:$0xff]   ;;  %v2093_v49 = vld [vmem:[%s2388_s3] ss:$0 sm:$0xff] }
  0x12   :  { %1459 = vmatmul.mubr.msk.f32.gmra.mxu0 %vm65_vm0, %v29_v9  ;;  %1550 = vmatprep.subr.bf16.mxu0 %v1669_v45 }
  0x13   :  { %1461 = vmatprep.mubr.msk.f32.mxu0 %vm65_vm0, %v30_v11  ;;  %1507 = vmatpush3.bf16.msra.mxu1 %v1663_v39 }
  0x14   :  { %1508 = vmatprep.subr.bf16.mxu1 %v1664_v40 }
  0x15   :  { %1551 = vmatpush3.bf16.msra.mxu0 %v1669_v45 }
  0x16   :  { %1462 = vmatmul.mubr.msk.f32.gmra.mxu0 %vm65_vm0, %v31_v13  ;;  %1552 = vmatprep.subr.bf16.mxu0 %v1670_v46 }
  0x17   :  { %1464 = vmatprep.mubr.msk.f32.mxu0 %vm65_vm0, %v32_v14  ;;  %1509 = vmatpush3.bf16.msra.mxu1 %v1664_v40 }
  0x18   :  { %1510 = vmatprep.subr.bf16.mxu1 %v1665_v41 }
  0x19   :  { %1553 = vmatpush3.bf16.msra.mxu0 %v1670_v46 }
  0x1a   :  { %1465 = vmatmul.mubr.msk.f32.gmra.mxu0 %vm65_vm0, %v33_v15  ;;  %1554 = vmatprep.subr.bf16.mxu0 %v1671_v47 }
  0x1b   :  { %1467 = vmatprep.mubr.msk.f32.mxu0 %vm65_vm0, %v34_v16  ;;  %1511 = vmatpush3.bf16.msra.mxu1 %v1665_v41 }
  0x1c   :  { %1512 = vmatprep.subr.bf16.mxu1 %v1666_v42 }
  0x1d   :  { %1555 = vmatpush3.bf16.msra.mxu0 %v1671_v47 }
  0x1e   :  { %1468 = vmatmul.mubr.msk.f32.gmra.mxu0 %vm65_vm0, %v35_v17  ;;  %1556 = vmatprep.subr.bf16.mxu0 %v1672_v48 }
  0x1f   :  { %1470 = vmatprep.mubr.msk.f32.mxu0 %vm65_vm0, %v36_v18  ;;  %1513 = vmatpush3.bf16.msra.mxu1 %v1666_v42 }
  0x20   :  { %1514 = vmatprep.subr.bf16.mxu1 %v1667_v43 }
  0x21   :  { %1557 = vmatpush3.bf16.msra.mxu0 %v1672_v48 }
  0x22   :  { %1471 = vmatmul.mubr.msk.f32.gmra.mxu0 %vm65_vm0, %v37_v19 }
  0x23   :  { %1473 = vmatprep.mubr.msk.f32.mxu0 %vm65_vm0, %v38_v20  ;;  %1515 = vmatpush3.bf16.msra.mxu1 %v1667_v43 }
  0x26   :  { %1474 = vmatmul.mubr.msk.f32.gmra.mxu0 %vm65_vm0, %v39_v21 }
  0x27   :  { %1476 = vmatprep.mubr.msk.f32.mxu0 %vm65_vm0, %v40_v22 }
  0x2a   :  { %1477 = vmatmul.mubr.msk.f32.gmra.mxu0 %vm65_vm0, %v41_v23 }
  0x2b   :  { %1479 = vmatprep.mubr.msk.f32.mxu0 %vm65_vm0, %v42_v24 }
  0x2e   :  { %1480 = vmatmul.mubr.msk.f32.gmra.mxu0 %vm65_vm0, %v43_v25 }
  0x2f   :  { %1482 = vmatprep.mubr.msk.f32.mxu0 %vm65_vm0, %v44_v26 }
  0x32   :  { %1483 = vmatmul.mubr.msk.f32.gmra.mxu0 %vm65_vm0, %v45_v27 }
  0x33   :  { %1485 = vmatprep.mubr.msk.f32.mxu0 %vm65_vm0, %v46_v28 }
  0x36   :  { %1486 = vmatmul.mubr.msk.f32.gmra.mxu0 %vm65_vm0, %v47_v29 }
  0x37   :  { %1488 = vmatprep.mubr.msk.f32.mxu0 %vm65_vm0, %v48_v30 }
  0x3a   :  { %1489 = vmatmul.mubr.msk.f32.gmra.mxu0 %vm65_vm0, %v49_v31 }
  0x3b   :  { %1491 = vmatprep.mubr.msk.f32.mxu0 %vm65_vm0, %v50_v32 }
  0x3e   :  { %1492 = vmatmul.mubr.msk.f32.gmra.mxu0 %vm65_vm0, %v51_v33 }
  0x3f   :  { %1494 = vmatprep.mubr.msk.f32.mxu0 %vm65_vm0, %v52_v34 }
  0x42   :  { %1495 = vmatmul.mubr.msk.f32.gmra.mxu0 %vm65_vm0, %v53_v35 }
  0x43   :  { %1497 = vmatprep.mubr.msk.f32.mxu0 %vm65_vm0, %v54_v36 }
  0x46   :  { %1498 = vmatmul.mubr.msk.f32.gmra.mxu0 %vm65_vm0, %v55_v37 }
  0xca   :  { %v1454_v50 = vpop.f32.mrf.mxu0 }
  0xcb   :  { %v234_v51 = vadd.f32 %v1454_v50, %v2093_v49 }
  0xcc   :  { %v228_v52 = vpop.f32.mrf.mxu0 }
  0xcd   :  { %v229_v53 = vadd.f32 %v2093_v49, %v228_v52  ;;  %1684 = vtanh.f32 %v234_v51 }
  0xce   :  { %v1457_v54 = vpop.f32.mrf.mxu0 }
  0xcf   :  { %1686 = vtanh.f32 %v229_v53  ;;  %v244_v55 = vadd.f32 %v1457_v54, %v2093_v49 }
  0xd0   :  { %v238_v56 = vpop.f32.mrf.mxu0 }
  0xd1   :  { %v239_v57 = vadd.f32 %v2093_v49, %v238_v56  ;;  %1688 = vtanh.f32 %v244_v55 }
  0xd2   :  { %v1460_v58 = vpop.f32.mrf.mxu0 }
  0xd3   :  { %1690 = vtanh.f32 %v239_v57  ;;  %v254_v59 = vadd.f32 %v1460_v58, %v2093_v49 }
  0xd4   :  { %v248_v60 = vpop.f32.mrf.mxu0 }
  0xd5   :  { %v249_v61 = vadd.f32 %v2093_v49, %v248_v60  ;;  %1692 = vtanh.f32 %v254_v59 }
  0xd6   :  { %v1463_v62 = vpop.f32.mrf.mxu0 }
  0xd7   :  { %1694 = vtanh.f32 %v249_v61  ;;  %v264_v63 = vadd.f32 %v1463_v62, %v2093_v49 }
  0xd8   :  { %v258_v0 = vpop.f32.mrf.mxu0 }
  0xd9   :  { %v259_v1 = vadd.f32 %v2093_v49, %v258_v0  ;;  %1696 = vtanh.f32 %v264_v63 }
  0xda   :  { %v1466_v2 = vpop.f32.mrf.mxu0  ;;  %v1685_v3 = vpop.eup %1684 }
  0xdb   :  { %1698 = vtanh.f32 %v259_v1  ;;  %v274_v4 = vadd.f32 %v1466_v2, %v2093_v49 }
  0xdc   :  { %v1687_v5 = vpop.eup %1686  ;;  %v268_v6 = vpop.f32.mrf.mxu0 }
  0xdd   :  { %v269_v7 = vadd.f32 %v2093_v49, %v268_v6  ;;  %v419_v8 = vpack.c.bf16 %v1685_v3, %v1687_v5  ;;  %1700 = vtanh.f32 %v274_v4 }
  0xde   :  { %v1469_v9 = vpop.f32.mrf.mxu0  ;;  %v1689_v10 = vpop.eup %1688 }
  0xdf   :  { %1702 = vtanh.f32 %v269_v7  ;;  %v284_v11 = vadd.f32 %v1469_v9, %v2093_v49  ;;  %1516 = vmatprep.mubr.bf16.mxu1 %v419_v8 }
  0xe0   :  { %v1691_v12 = vpop.eup %1690  ;;  %v278_v13 = vpop.f32.mrf.mxu0 }
  0xe1   :  { %v279_v14 = vadd.f32 %v2093_v49, %v278_v13  ;;  %v420_v15 = vpack.c.bf16 %v1689_v10, %v1691_v12  ;;  %1704 = vtanh.f32 %v284_v11 }
  0xe2   :  { %v1472_v16 = vpop.f32.mrf.mxu0  ;;  %v1693_v17 = vpop.eup %1692 }
  0xe3   :  { %1706 = vtanh.f32 %v279_v14  ;;  %v294_v18 = vadd.f32 %v1472_v16, %v2093_v49  ;;  %1517 = vmatmul.mubr.bf16.vlgmr.msra.gmra.mxu1 %v420_v15 }
  0xe4   :  { %v1695_v19 = vpop.eup %1694  ;;  %v288_v20 = vpop.f32.mrf.mxu0 }
  0xe5   :  { %v289_v21 = vadd.f32 %v2093_v49, %v288_v20  ;;  %v421_v22 = vpack.c.bf16 %v1693_v17, %v1695_v19  ;;  %1708 = vtanh.f32 %v294_v18 }
  0xe6   :  { %v1475_v23 = vpop.f32.mrf.mxu0  ;;  %v1697_v24 = vpop.eup %1696 }
  0xe7   :  { %1710 = vtanh.f32 %v289_v21  ;;  %v304_v25 = vadd.f32 %v1475_v23, %v2093_v49  ;;  %1520 = vmatprep.mubr.bf16.mxu1 %v421_v22 }
  0xe8   :  { %v1699_v26 = vpop.eup %1698  ;;  %v298_v27 = vpop.f32.mrf.mxu0 }
  0xe9   :  { %v299_v28 = vadd.f32 %v2093_v49, %v298_v27  ;;  %v422_v29 = vpack.c.bf16 %v1697_v24, %v1699_v26  ;;  %1712 = vtanh.f32 %v304_v25 }
  0xea   :  { %v1478_v30 = vpop.f32.mrf.mxu0  ;;  %v1701_v31 = vpop.eup %1700 }
  0xeb   :  { %1714 = vtanh.f32 %v299_v28  ;;  %v314_v32 = vadd.f32 %v1478_v30, %v2093_v49  ;;  %1521 = vmatmul.mubr.bf16.gmra.mxu1 %v422_v29 }
  0xec   :  { %v1703_v33 = vpop.eup %1702  ;;  %v308_v34 = vpop.f32.mrf.mxu0 }
  0xed   :  { %v309_v35 = vadd.f32 %v2093_v49, %v308_v34  ;;  %v423_v36 = vpack.c.bf16 %v1701_v31, %v1703_v33  ;;  %1716 = vtanh.f32 %v314_v32 }
  0xee   :  { %v1481_v37 = vpop.f32.mrf.mxu0  ;;  %v1705_v38 = vpop.eup %1704 }
  0xef   :  { %1718 = vtanh.f32 %v309_v35  ;;  %v324_v39 = vadd.f32 %v1481_v37, %v2093_v49  ;;  %1524 = vmatprep.mubr.bf16.mxu1 %v423_v36  ;;  %v1674_v35 = vld [vmem:[%s2387_s2 + $0x48] sm:$0xff]   ;;  %v1675_v36 = vld [vmem:[%s2387_s2 + $0x40] sm:$0xff]   ;;  %v1676_v37 = vld [vmem:[%s2389_s4 + $0x38] sm:$0xff]  }
  0xf0   :  { %v1707_v40 = vpop.eup %1706  ;;  %v318_v41 = vpop.f32.mrf.mxu0  ;;  %1644 = vmatprep.subr.bf16.mxu1 %v1676_v37 }
  0xf1   :  { %v319_v42 = vadd.f32 %v2093_v49, %v318_v41  ;;  %v424_v43 = vpack.c.bf16 %v1705_v38, %v1707_v40  ;;  %1720 = vtanh.f32 %v324_v39  ;;  %v2142_v38 = vld [vmem:[%s2389_s4 + $0x30] sm:$0xff]   ;;  %1652 = vmatpush3.bf16.msra.mxu1 %v1676_v37  ;;  %v2148_v39 = vld [vmem:[%s2389_s4 + $0x28] sm:$0xff]   ;;  %v2155_v40 = vld [vmem:[%s2389_s4 + $0x20] sm:$0xff]  }
  0xf2   :  { %v1484_v44 = vpop.f32.mrf.mxu0  ;;  %v1709_v45 = vpop.eup %1708  ;;  %1645 = vmatprep.subr.bf16.mxu1 %v2142_v38 }
  0xf3   :  { %1722 = vtanh.f32 %v319_v42  ;;  %v334_v46 = vadd.f32 %v1484_v44, %v2093_v49  ;;  %1525 = vmatmul.mubr.bf16.gmra.mxu1 %v424_v43  ;;  %v2163_v42 = vld [vmem:[%s2388_s3 + $0x1] ss:$0 sm:$0xff] }
  0xf4   :  { %v1711_v47 = vpop.eup %1710  ;;  %v328_v48 = vpop.f32.mrf.mxu0 }
  0xf5   :  { %v329_v50 = vadd.f32 %v2093_v49, %v328_v48  ;;  %v425_v51 = vpack.c.bf16 %v1709_v45, %v1711_v47  ;;  %1724 = vtanh.f32 %v334_v46  ;;  %1653 = vmatpush3.bf16.msra.mxu1 %v2142_v38 }
  0xf6   :  { %v1487_v52 = vpop.f32.mrf.mxu0  ;;  %v1713_v53 = vpop.eup %1712  ;;  %1646 = vmatprep.subr.bf16.mxu1 %v2148_v39 }
  0xf7   :  { %1726 = vtanh.f32 %v329_v50  ;;  %v344_v54 = vadd.f32 %v1487_v52, %v2093_v49  ;;  %1528 = vmatprep.mubr.bf16.mxu1 %v425_v51 }
  0xf8   :  { %v1715_v55 = vpop.eup %1714  ;;  %v338_v56 = vpop.f32.mrf.mxu0 }
  0xf9   :  { %v339_v57 = vadd.f32 %v2093_v49, %v338_v56  ;;  %v426_v58 = vpack.c.bf16 %v1713_v53, %v1715_v55  ;;  %1728 = vtanh.f32 %v344_v54  ;;  %1654 = vmatpush3.bf16.msra.mxu1 %v2148_v39 }
  0xfa   :  { %v1490_v59 = vpop.f32.mrf.mxu0  ;;  %v1717_v60 = vpop.eup %1716  ;;  %1647 = vmatprep.subr.bf16.mxu1 %v2155_v40 }
  0xfb   :  { %1730 = vtanh.f32 %v339_v57  ;;  %v354_v61 = vadd.f32 %v1490_v59, %v2093_v49  ;;  %1529 = vmatmul.mubr.bf16.gmra.mxu1 %v426_v58 }
  0xfc   :  { %v1719_v62 = vpop.eup %1718  ;;  %v348_v63 = vpop.f32.mrf.mxu0 }
  0xfd   :  { %v349_v0 = vadd.f32 %v2093_v49, %v348_v63  ;;  %v427_v1 = vpack.c.bf16 %v1717_v60, %v1719_v62  ;;  %1732 = vtanh.f32 %v354_v61  ;;  %1655 = vmatpush3.bf16.msra.mxu1 %v2155_v40 }
  0xfe   :  { %v1493_v2 = vpop.f32.mrf.mxu0  ;;  %v1721_v3 = vpop.eup %1720 }
  0xff   :  { %1734 = vtanh.f32 %v349_v0  ;;  %v364_v4 = vadd.f32 %v1493_v2, %v2093_v49  ;;  %1532 = vmatprep.mubr.bf16.mxu1 %v427_v1 }
 0x100   :  { %v1723_v5 = vpop.eup %1722  ;;  %v358_v6 = vpop.f32.mrf.mxu0 }
 0x101   :  { %v359_v7 = vadd.f32 %v2093_v49, %v358_v6  ;;  %v428_v8 = vpack.c.bf16 %v1721_v3, %v1723_v5  ;;  %1736 = vtanh.f32 %v364_v4 }
 0x102   :  { %v1496_v9 = vpop.f32.mrf.mxu0  ;;  %v1725_v10 = vpop.eup %1724 }
 0x103   :  { %1738 = vtanh.f32 %v359_v7  ;;  %v374_v11 = vadd.f32 %v1496_v9, %v2093_v49  ;;  %1533 = vmatmul.mubr.bf16.gmra.mxu1 %v428_v8 }
 0x104   :  { %v1727_v12 = vpop.eup %1726  ;;  %v368_v13 = vpop.f32.mrf.mxu0 }
 0x105   :  { %v369_v14 = vadd.f32 %v2093_v49, %v368_v13  ;;  %v429_v15 = vpack.c.bf16 %v1725_v10, %v1727_v12  ;;  %1740 = vtanh.f32 %v374_v11 }
 0x106   :  { %v1499_v16 = vpop.f32.mrf.mxu0  ;;  %v1729_v17 = vpop.eup %1728 }
 0x107   :  { %1742 = vtanh.f32 %v369_v14  ;;  %v384_v18 = vadd.f32 %v1499_v16, %v2093_v49  ;;  %1536 = vmatprep.mubr.bf16.mxu1 %v429_v15 }
 0x108   :  { %v1731_v19 = vpop.eup %1730  ;;  %v378_v20 = vpop.f32.mrf.mxu0 }
 0x109   :  { %v379_v21 = vadd.f32 %v2093_v49, %v378_v20  ;;  %v430_v22 = vpack.c.bf16 %v1729_v17, %v1731_v19  ;;  %1744 = vtanh.f32 %v384_v18  ;;  %v1673_v49 = vld [vmem:[%s2387_s2 + $0x50] sm:$0xff]  }
 0x10a   :  { %v1733_v23 = vpop.eup %1732  ;;  %1558 = vmatprep.subr.bf16.mxu0 %v1673_v49 }
 0x10b   :  { %1746 = vtanh.f32 %v379_v21  ;;  %1537 = vmatmul.mubr.bf16.gmra.mxu1 %v430_v22  ;;  %1559 = vmatpush3.bf16.msra.mxu0 %v1673_v49 }
 0x10c   :  { %v1735_v24 = vpop.eup %1734  ;;  %1560 = vmatprep.subr.bf16.mxu0 %v1674_v35 }
 0x10d   :  { %v431_v25 = vpack.c.bf16 %v1733_v23, %v1735_v24 }
 0x10e   :  { %v1737_v26 = vpop.eup %1736 }
 0x10f   :  { %1540 = vmatprep.mubr.bf16.mxu1 %v431_v25  ;;  %1561 = vmatpush3.bf16.msra.mxu0 %v1674_v35 }
 0x110   :  { %v1739_v27 = vpop.eup %1738  ;;  %1562 = vmatprep.subr.bf16.mxu0 %v1675_v36 }
 0x111   :  { %v432_v28 = vpack.c.bf16 %v1737_v26, %v1739_v27 }
 0x112   :  { %v1741_v29 = vpop.eup %1740 }
 0x113   :  { %1541 = vmatmul.mubr.bf16.gmra.mxu1 %v432_v28  ;;  %1563 = vmatpush3.bf16.msra.mxu0 %v1675_v36 }
 0x114   :  { %v1743_v30 = vpop.eup %1742  ;;  %1596 = vmatprep.subr.bf16.mxu0 %v1676_v37 }
 0x115   :  { %v433_v31 = vpack.c.bf16 %v1741_v29, %v1743_v30 }
 0x116   :  { %v1745_v32 = vpop.eup %1744 }
 0x117   :  { %1544 = vmatprep.mubr.bf16.mxu1 %v433_v31 }
 0x118   :  { %v1747_v33 = vpop.eup %1746 }
 0x119   :  { %v434_v34 = vpack.c.bf16 %v1745_v32, %v1747_v33 }
 0x11b   :  { %1545 = vmatmul.mubr.bf16.gmra.mxu1 %v434_v34 }
 0x1a3   :  { %v1518_v41 = vpop.f32.mrf.mxu1 }
 0x1a4   :  { %v547_v47 = vadd.f32 %v1518_v41, %v2163_v42 }
 0x1a5   :  { %v538_v43 = vpop.f32.mrf.mxu1 }
 0x1a6   :  { %v539_v44 = vadd.f32 %v2163_v42, %v538_v43 }
 0x1a7   :  { %v1519_v45 = vpop.f32.mrf.mxu1 }
 0x1a8   :  { %v550_v46 = vadd.f32 %v1519_v45, %v2163_v42  ;;  %1748 = vtanh.f32 %v539_v44 }
 0x1a9   :  { %v541_v48 = vpop.f32.mrf.mxu1 }
 0x1aa   :  { %v542_v50 = vadd.f32 %v2163_v42, %v541_v48  ;;  %1750 = vtanh.f32 %v550_v46 }
 0x1ab   :  { %v1522_v51 = vpop.f32.mrf.mxu1 }
 0x1ac   :  { %1752 = vtanh.f32 %v542_v50  ;;  %v563_v56 = vadd.f32 %v1522_v51, %v2163_v42 }
 0x1ad   :  { %1754 = vtanh.f32 %v547_v47  ;;  %v554_v52 = vpop.f32.mrf.mxu1 }
 0x1ae   :  { %v555_v53 = vadd.f32 %v2163_v42, %v554_v52 }
 0x1af   :  { %v1523_v54 = vpop.f32.mrf.mxu1 }
 0x1b0   :  { %v566_v55 = vadd.f32 %v1523_v54, %v2163_v42  ;;  %1756 = vtanh.f32 %v555_v53 }
 0x1b1   :  { %v557_v57 = vpop.f32.mrf.mxu1 }
 0x1b2   :  { %v558_v58 = vadd.f32 %v2163_v42, %v557_v57  ;;  %1758 = vtanh.f32 %v566_v55 }
 0x1b3   :  { %v1526_v59 = vpop.f32.mrf.mxu1 }
 0x1b4   :  { %1760 = vtanh.f32 %v558_v58  ;;  %v579_v3 = vadd.f32 %v1526_v59, %v2163_v42 }
 0x1b5   :  { %1762 = vtanh.f32 %v563_v56  ;;  %v570_v60 = vpop.f32.mrf.mxu1  ;;  %v1749_v62 = vpop.eup %1748 }
 0x1b6   :  { %v571_v61 = vadd.f32 %v2163_v42, %v570_v60 }
 0x1b7   :  { %v1527_v63 = vpop.f32.mrf.mxu1  ;;  %v1751_v0 = vpop.eup %1750 }
 0x1b8   :  { %v582_v1 = vadd.f32 %v1527_v63, %v2163_v42  ;;  %1764 = vtanh.f32 %v571_v61 }
 0x1b9   :  { %v1753_v2 = vpop.eup %1752  ;;  %v573_v4 = vpop.f32.mrf.mxu1 }
 0x1ba   :  { %v1755_v5 = vpop.eup %1754  ;;  %v574_v6 = vadd.f32 %v2163_v42, %v573_v4  ;;  %v697_v7 = vpack.c.bf16 %v1753_v2, %v1749_v62  ;;  %1766 = vtanh.f32 %v582_v1 }
 0x1bb   :  { %v1530_v8 = vpop.f32.mrf.mxu1  ;;  %v698_v9 = vpack.c.bf16 %v1751_v0, %v1755_v5 }
 0x1bc   :  { %1768 = vtanh.f32 %v574_v6  ;;  %1564 = vmatprep.mubr.bf16.mxu0 %v697_v7  ;;  %v595_v17 = vadd.f32 %v1530_v8, %v2163_v42 }
 0x1bd   :  { %1770 = vtanh.f32 %v579_v3  ;;  %v586_v10 = vpop.f32.mrf.mxu1  ;;  %1565 = vmatmul.mubr.bf16.vlgmr.msra.gmra.mxu0 %v698_v9  ;;  %v1757_v12 = vpop.eup %1756 }
 0x1be   :  { %v587_v11 = vadd.f32 %v2163_v42, %v586_v10  ;;  %1597 = vmatpush3.bf16.msra.mxu0 %v1676_v37 }
 0x1bf   :  { %v1531_v13 = vpop.f32.mrf.mxu1  ;;  %1598 = vmatprep.subr.bf16.mxu0 %v2142_v38  ;;  %v1759_v14 = vpop.eup %1758 }
 0x1c0   :  { %v598_v15 = vadd.f32 %v1531_v13, %v2163_v42  ;;  %1772 = vtanh.f32 %v587_v11 }
 0x1c1   :  { %v1761_v16 = vpop.eup %1760  ;;  %v589_v18 = vpop.f32.mrf.mxu1 }
 0x1c2   :  { %v1763_v19 = vpop.eup %1762  ;;  %v590_v20 = vadd.f32 %v2163_v42, %v589_v18  ;;  %v699_v21 = vpack.c.bf16 %v1761_v16, %v1757_v12  ;;  %1599 = vmatpush3.bf16.msra.mxu0 %v2142_v38  ;;  %1774 = vtanh.f32 %v598_v15 }
 0x1c3   :  { %v1534_v22 = vpop.f32.mrf.mxu1  ;;  %v700_v23 = vpack.c.bf16 %v1759_v14, %v1763_v19  ;;  %1600 = vmatprep.subr.bf16.mxu0 %v2148_v39 }
 0x1c4   :  { %1776 = vtanh.f32 %v590_v20  ;;  %1568 = vmatprep.mubr.bf16.mxu0 %v699_v21  ;;  %v611_v31 = vadd.f32 %v1534_v22, %v2163_v42 }
 0x1c5   :  { %1778 = vtanh.f32 %v595_v17  ;;  %v602_v24 = vpop.f32.mrf.mxu1  ;;  %1569 = vmatmul.mubr.bf16.gmra.mxu0 %v700_v23  ;;  %v1765_v26 = vpop.eup %1764 }
 0x1c6   :  { %v603_v25 = vadd.f32 %v2163_v42, %v602_v24  ;;  %1601 = vmatpush3.bf16.msra.mxu0 %v2148_v39 }
 0x1c7   :  { %v1535_v27 = vpop.f32.mrf.mxu1  ;;  %1602 = vmatprep.subr.bf16.mxu0 %v2155_v40  ;;  %v1767_v28 = vpop.eup %1766 }
 0x1c8   :  { %v614_v29 = vadd.f32 %v1535_v27, %v2163_v42  ;;  %1780 = vtanh.f32 %v603_v25  ;;  %v1680_v27 = vld [vmem:[%s2389_s4 + $0x18] sm:$0xff]  }
 0x1c9   :  { %v1769_v30 = vpop.eup %1768  ;;  %v605_v32 = vpop.f32.mrf.mxu1  ;;  %1648 = vmatprep.subr.bf16.mxu1 %v1680_v27 }
 0x1ca   :  { %v1771_v33 = vpop.eup %1770  ;;  %v606_v34 = vadd.f32 %v2163_v42, %v605_v32  ;;  %v701_v49 = vpack.c.bf16 %v1769_v30, %v1765_v26  ;;  %1603 = vmatpush3.bf16.msra.mxu0 %v2155_v40  ;;  %1782 = vtanh.f32 %v614_v29  ;;  %1656 = vmatpush3.bf16.msra.mxu1 %v1680_v27  ;;  %v1682_v29 = vld [vmem:[%s2389_s4 + $0x8] sm:$0xff]   ;;  %v1683_v30 = vld [vmem:[%s2389_s4] sm:$0xff]  }
 0x1cb   :  { %v1538_v35 = vpop.f32.mrf.mxu1  ;;  %v702_v36 = vpack.c.bf16 %v1767_v28, %v1771_v33  ;;  %1604 = vmatprep.subr.bf16.mxu0 %v1680_v27  ;;  %v1681_v28 = vld [vmem:[%s2389_s4 + $0x10] sm:$0xff]   ;;  %v2218_v32 = vld [vmem:[%s2388_s3 + $0x2] ss:$0 sm:$0xff] }
 0x1cc   :  { %1784 = vtanh.f32 %v606_v34  ;;  %1572 = vmatprep.mubr.bf16.mxu0 %v701_v49  ;;  %v627_v46 = vadd.f32 %v1538_v35, %v2163_v42  ;;  %1649 = vmatprep.subr.bf16.mxu1 %v1681_v28 }
 0x1cd   :  { %1786 = vtanh.f32 %v611_v31  ;;  %v618_v37 = vpop.f32.mrf.mxu1  ;;  %1573 = vmatmul.mubr.bf16.gmra.mxu0 %v702_v36  ;;  %v1773_v39 = vpop.eup %1772 }
 0x1ce   :  { %v619_v38 = vadd.f32 %v2163_v42, %v618_v37  ;;  %1605 = vmatpush3.bf16.msra.mxu0 %v1680_v27  ;;  %1657 = vmatpush3.bf16.msra.mxu1 %v1681_v28 }
 0x1cf   :  { %v1539_v41 = vpop.f32.mrf.mxu1  ;;  %v1775_v43 = vpop.eup %1774  ;;  %1606 = vmatprep.subr.bf16.mxu0 %v1681_v28  ;;  %1650 = vmatprep.subr.bf16.mxu1 %v1682_v29 }
 0x1d0   :  { %v630_v44 = vadd.f32 %v1539_v41, %v2163_v42  ;;  %1788 = vtanh.f32 %v619_v38 }
 0x1d1   :  { %v1777_v45 = vpop.eup %1776  ;;  %v621_v47 = vpop.f32.mrf.mxu1 }
 0x1d2   :  { %v1779_v40 = vpop.eup %1778  ;;  %v622_v48 = vadd.f32 %v2163_v42, %v621_v47  ;;  %v703_v50 = vpack.c.bf16 %v1777_v45, %v1773_v39  ;;  %1790 = vtanh.f32 %v630_v44  ;;  %1607 = vmatpush3.bf16.msra.mxu0 %v1681_v28  ;;  %1658 = vmatpush3.bf16.msra.mxu1 %v1682_v29 }
 0x1d3   :  { %v1542_v51 = vpop.f32.mrf.mxu1  ;;  %v704_v52 = vpack.c.bf16 %v1775_v43, %v1779_v40  ;;  %1608 = vmatprep.subr.bf16.mxu0 %v1682_v29  ;;  %1651 = vmatprep.subr.bf16.mxu1 %v1683_v30 }
 0x1d4   :  { %1792 = vtanh.f32 %v622_v48  ;;  %1576 = vmatprep.mubr.bf16.mxu0 %v703_v50  ;;  %v643_v60 = vadd.f32 %v1542_v51, %v2163_v42 }
 0x1d5   :  { %1794 = vtanh.f32 %v627_v46  ;;  %v634_v53 = vpop.f32.mrf.mxu1  ;;  %1577 = vmatmul.mubr.bf16.gmra.mxu0 %v704_v52  ;;  %v1781_v55 = vpop.eup %1780 }
 0x1d6   :  { %v635_v54 = vadd.f32 %v2163_v42, %v634_v53  ;;  %1609 = vmatpush3.bf16.msra.mxu0 %v1682_v29  ;;  %1659 = vmatpush3.bf16.msra.mxu1 %v1683_v30 }
 0x1d7   :  { %v1543_v56 = vpop.f32.mrf.mxu1  ;;  %v1783_v57 = vpop.eup %1782  ;;  %1610 = vmatprep.subr.bf16.mxu0 %v1683_v30 }
 0x1d8   :  { %v646_v58 = vadd.f32 %v1543_v56, %v2163_v42  ;;  %1796 = vtanh.f32 %v635_v54 }
 0x1d9   :  { %v1785_v59 = vpop.eup %1784  ;;  %v637_v61 = vpop.f32.mrf.mxu1 }
 0x1da   :  { %v1787_v62 = vpop.eup %1786  ;;  %v638_v63 = vadd.f32 %v2163_v42, %v637_v61  ;;  %v705_v0 = vpack.c.bf16 %v1785_v59, %v1781_v55  ;;  %1798 = vtanh.f32 %v646_v58  ;;  %1611 = vmatpush3.bf16.msra.mxu0 %v1683_v30 }
 0x1db   :  { %v1546_v1 = vpop.f32.mrf.mxu1  ;;  %v706_v2 = vpack.c.bf16 %v1783_v57, %v1787_v62 }
 0x1dc   :  { %1800 = vtanh.f32 %v638_v63  ;;  %1580 = vmatprep.mubr.bf16.mxu0 %v705_v0  ;;  %v659_v10 = vadd.f32 %v1546_v1, %v2163_v42 }
 0x1dd   :  { %1802 = vtanh.f32 %v643_v60  ;;  %v650_v3 = vpop.f32.mrf.mxu1  ;;  %1581 = vmatmul.mubr.bf16.gmra.mxu0 %v706_v2  ;;  %v1789_v5 = vpop.eup %1788 }
 0x1de   :  { %v651_v4 = vadd.f32 %v2163_v42, %v650_v3 }
 0x1df   :  { %v1547_v6 = vpop.f32.mrf.mxu1  ;;  %v1791_v7 = vpop.eup %1790 }
 0x1e0   :  { %v662_v8 = vadd.f32 %v1547_v6, %v2163_v42  ;;  %1804 = vtanh.f32 %v651_v4 }
 0x1e1   :  { %v1793_v9 = vpop.eup %1792  ;;  %v653_v11 = vpop.f32.mrf.mxu1 }
 0x1e2   :  { %v1795_v12 = vpop.eup %1794  ;;  %v654_v13 = vadd.f32 %v2163_v42, %v653_v11  ;;  %v707_v14 = vpack.c.bf16 %v1793_v9, %v1789_v5  ;;  %1806 = vtanh.f32 %v662_v8 }
 0x1e3   :  { %v708_v15 = vpack.c.bf16 %v1791_v7, %v1795_v12 }
 0x1e4   :  { %1808 = vtanh.f32 %v654_v13  ;;  %1584 = vmatprep.mubr.bf16.mxu0 %v707_v14 }
 0x1e5   :  { %1810 = vtanh.f32 %v659_v10  ;;  %1585 = vmatmul.mubr.bf16.gmra.mxu0 %v708_v15  ;;  %v1797_v16 = vpop.eup %1796 }
 0x1e7   :  { %v1799_v17 = vpop.eup %1798 }
 0x1e9   :  { %v1801_v18 = vpop.eup %1800 }
 0x1ea   :  { %v1803_v19 = vpop.eup %1802  ;;  %v709_v20 = vpack.c.bf16 %v1801_v18, %v1797_v16 }
 0x1eb   :  { %v710_v21 = vpack.c.bf16 %v1799_v17, %v1803_v19 }
 0x1ec   :  { %1588 = vmatprep.mubr.bf16.mxu0 %v709_v20 }
 0x1ed   :  { %1589 = vmatmul.mubr.bf16.gmra.mxu0 %v710_v21  ;;  %v1805_v22 = vpop.eup %1804 }
 0x1ef   :  { %v1807_v23 = vpop.eup %1806 }
 0x1f1   :  { %v1809_v24 = vpop.eup %1808 }
 0x1f2   :  { %v1811_v25 = vpop.eup %1810  ;;  %v711_v42 = vpack.c.bf16 %v1809_v24, %v1805_v22 }
 0x1f3   :  { %v712_v26 = vpack.c.bf16 %v1807_v23, %v1811_v25 }
 0x1f4   :  { %1592 = vmatprep.mubr.bf16.mxu0 %v711_v42 }
 0x1f5   :  { %1593 = vmatmul.mubr.bf16.gmra.mxu0 %v712_v26 }
 0x27d   :  { %v1566_v31 = vpop.f32.mrf.mxu0 }
 0x27e   :  { %v826_v36 = vadd.f32 %v1566_v31, %v2218_v32 }
 0x27f   :  { %v817_v33 = vpop.f32.mrf.mxu0 }
 0x280   :  { %v818_v34 = vadd.f32 %v2218_v32, %v817_v33 }
 0x281   :  { %v1567_v49 = vpop.f32.mrf.mxu0 }
 0x282   :  { %v829_v35 = vadd.f32 %v1567_v49, %v2218_v32  ;;  %1812 = vtanh.f32 %v818_v34 }
 0x283   :  { %v820_v37 = vpop.f32.mrf.mxu0 }
 0x284   :  { %v821_v38 = vadd.f32 %v2218_v32, %v820_v37  ;;  %1814 = vtanh.f32 %v829_v35 }
 0x285   :  { %v1570_v39 = vpop.f32.mrf.mxu0 }
 0x286   :  { %1816 = vtanh.f32 %v821_v38  ;;  %v842_v46 = vadd.f32 %v1570_v39, %v2218_v32 }
 0x287   :  { %1818 = vtanh.f32 %v826_v36  ;;  %v833_v41 = vpop.f32.mrf.mxu0 }
 0x288   :  { %v834_v43 = vadd.f32 %v2218_v32, %v833_v41 }
 0x289   :  { %v1571_v44 = vpop.f32.mrf.mxu0 }
 0x28a   :  { %v845_v45 = vadd.f32 %v1571_v44, %v2218_v32  ;;  %1820 = vtanh.f32 %v834_v43 }
 0x28b   :  { %v836_v47 = vpop.f32.mrf.mxu0 }
 0x28c   :  { %v837_v40 = vadd.f32 %v2218_v32, %v836_v47  ;;  %1822 = vtanh.f32 %v845_v45 }
 0x28d   :  { %v1574_v48 = vpop.f32.mrf.mxu0 }
 0x28e   :  { %1824 = vtanh.f32 %v837_v40  ;;  %v858_v57 = vadd.f32 %v1574_v48, %v2218_v32 }
 0x28f   :  { %1826 = vtanh.f32 %v842_v46  ;;  %v849_v50 = vpop.f32.mrf.mxu0  ;;  %v1813_v52 = vpop.eup %1812 }
 0x290   :  { %v850_v51 = vadd.f32 %v2218_v32, %v849_v50 }
 0x291   :  { %v1575_v53 = vpop.f32.mrf.mxu0  ;;  %v1815_v54 = vpop.eup %1814 }
 0x292   :  { %v861_v55 = vadd.f32 %v1575_v53, %v2218_v32  ;;  %1828 = vtanh.f32 %v850_v51 }
 0x293   :  { %v1817_v56 = vpop.eup %1816  ;;  %v852_v58 = vpop.f32.mrf.mxu0 }
 0x294   :  { %v1819_v59 = vpop.eup %1818  ;;  %v853_v60 = vadd.f32 %v2218_v32, %v852_v58  ;;  %v976_v61 = vpack.c.bf16 %v1817_v56, %v1813_v52  ;;  %1830 = vtanh.f32 %v861_v55 }
 0x295   :  { %v1578_v62 = vpop.f32.mrf.mxu0  ;;  %v977_v63 = vpack.c.bf16 %v1815_v54, %v1819_v59 }
 0x296   :  { %1832 = vtanh.f32 %v853_v60  ;;  %1612 = vmatprep.mubr.bf16.mxu0 %v976_v61  ;;  %v874_v7 = vadd.f32 %v1578_v62, %v2218_v32 }
 0x297   :  { %1834 = vtanh.f32 %v858_v57  ;;  %v865_v0 = vpop.f32.mrf.mxu0  ;;  %1613 = vmatmul.mubr.bf16.vlgmr.msra.gmra.mxu0 %v977_v63  ;;  %v1821_v2 = vpop.eup %1820 }
 0x298   :  { %v866_v1 = vadd.f32 %v2218_v32, %v865_v0 }
 0x299   :  { %v1579_v3 = vpop.f32.mrf.mxu0  ;;  %v1823_v4 = vpop.eup %1822 }
 0x29a   :  { %v877_v5 = vadd.f32 %v1579_v3, %v2218_v32  ;;  %1836 = vtanh.f32 %v866_v1 }
 0x29b   :  { %v1825_v6 = vpop.eup %1824  ;;  %v868_v8 = vpop.f32.mrf.mxu0 }
 0x29c   :  { %v1827_v9 = vpop.eup %1826  ;;  %v869_v10 = vadd.f32 %v2218_v32, %v868_v8  ;;  %v978_v11 = vpack.c.bf16 %v1825_v6, %v1821_v2  ;;  %1838 = vtanh.f32 %v877_v5 }
 0x29d   :  { %v1582_v12 = vpop.f32.mrf.mxu0  ;;  %v979_v13 = vpack.c.bf16 %v1823_v4, %v1827_v9 }
 0x29e   :  { %1840 = vtanh.f32 %v869_v10  ;;  %1616 = vmatprep.mubr.bf16.mxu1 %v978_v11  ;;  %v890_v21 = vadd.f32 %v1582_v12, %v2218_v32 }
 0x29f   :  { %1842 = vtanh.f32 %v874_v7  ;;  %v881_v14 = vpop.f32.mrf.mxu0  ;;  %1617 = vmatmul.mubr.bf16.vlgmr.msra.gmra.mxu1 %v979_v13  ;;  %v1829_v16 = vpop.eup %1828 }
 0x2a0   :  { %v882_v15 = vadd.f32 %v2218_v32, %v881_v14 }
 0x2a1   :  { %v1583_v17 = vpop.f32.mrf.mxu0  ;;  %v1831_v18 = vpop.eup %1830 }
 0x2a2   :  { %v893_v19 = vadd.f32 %v1583_v17, %v2218_v32  ;;  %1844 = vtanh.f32 %v882_v15  ;;  %v2255_v17 = vld [vmem:[%s2390_s5] ss:$0 sm:$0xff] }
 0x2a3   :  { %v1833_v20 = vpop.eup %1832  ;;  %v884_v22 = vpop.f32.mrf.mxu0 }
 0x2a4   :  { %v1835_v23 = vpop.eup %1834  ;;  %v885_v24 = vadd.f32 %v2218_v32, %v884_v22  ;;  %v980_v25 = vpack.c.bf16 %v1833_v20, %v1829_v16  ;;  %1846 = vtanh.f32 %v893_v19 }
 0x2a5   :  { %v1586_v42 = vpop.f32.mrf.mxu0  ;;  %v981_v26 = vpack.c.bf16 %v1831_v18, %v1835_v23 }
 0x2a6   :  { %1848 = vtanh.f32 %v885_v24  ;;  %1620 = vmatprep.mubr.bf16.mxu1 %v980_v25  ;;  %v906_v49 = vadd.f32 %v1586_v42, %v2218_v32 }
 0x2a7   :  { %1850 = vtanh.f32 %v890_v21  ;;  %v897_v27 = vpop.f32.mrf.mxu0  ;;  %1621 = vmatmul.mubr.bf16.gmra.mxu1 %v981_v26  ;;  %v1837_v29 = vpop.eup %1836 }
 0x2a8   :  { %v898_v28 = vadd.f32 %v2218_v32, %v897_v27 }
 0x2a9   :  { %v1587_v30 = vpop.f32.mrf.mxu0  ;;  %v1839_v31 = vpop.eup %1838 }
 0x2aa   :  { %v909_v33 = vadd.f32 %v1587_v30, %v2218_v32  ;;  %1852 = vtanh.f32 %v898_v28 }
 0x2ab   :  { %v1841_v34 = vpop.eup %1840  ;;  %v900_v35 = vpop.f32.mrf.mxu0 }
 0x2ac   :  { %v1843_v36 = vpop.eup %1842  ;;  %v901_v37 = vadd.f32 %v2218_v32, %v900_v35  ;;  %v982_v38 = vpack.c.bf16 %v1841_v34, %v1837_v29  ;;  %1854 = vtanh.f32 %v909_v33 }
 0x2ad   :  { %v1590_v39 = vpop.f32.mrf.mxu0  ;;  %v983_v41 = vpack.c.bf16 %v1839_v31, %v1843_v36 }
 0x2ae   :  { %1856 = vtanh.f32 %v901_v37  ;;  %1624 = vmatprep.mubr.bf16.mxu1 %v982_v38  ;;  %v922_v50 = vadd.f32 %v1590_v39, %v2218_v32 }
 0x2af   :  { %1858 = vtanh.f32 %v906_v49  ;;  %v913_v43 = vpop.f32.mrf.mxu0  ;;  %1625 = vmatmul.mubr.bf16.gmra.mxu1 %v983_v41  ;;  %v1845_v45 = vpop.eup %1844 }
 0x2b0   :  { %v914_v44 = vadd.f32 %v2218_v32, %v913_v43 }
 0x2b1   :  { %v1591_v46 = vpop.f32.mrf.mxu0  ;;  %v1847_v47 = vpop.eup %1846 }
 0x2b2   :  { %v925_v40 = vadd.f32 %v1591_v46, %v2218_v32  ;;  %1860 = vtanh.f32 %v914_v44 }
 0x2b3   :  { %v1849_v48 = vpop.eup %1848  ;;  %v916_v51 = vpop.f32.mrf.mxu0 }
 0x2b4   :  { %v1851_v52 = vpop.eup %1850  ;;  %v917_v53 = vadd.f32 %v2218_v32, %v916_v51  ;;  %v984_v54 = vpack.c.bf16 %v1849_v48, %v1845_v45  ;;  %1862 = vtanh.f32 %v925_v40 }
 0x2b5   :  { %v1594_v55 = vpop.f32.mrf.mxu0  ;;  %v985_v56 = vpack.c.bf16 %v1847_v47, %v1851_v52 }
 0x2b6   :  { %1864 = vtanh.f32 %v917_v53  ;;  %1628 = vmatprep.mubr.bf16.mxu1 %v984_v54  ;;  %v938_v0 = vadd.f32 %v1594_v55, %v2218_v32 }
 0x2b7   :  { %1866 = vtanh.f32 %v922_v50  ;;  %v929_v57 = vpop.f32.mrf.mxu0  ;;  %1629 = vmatmul.mubr.bf16.gmra.mxu1 %v985_v56  ;;  %v1853_v59 = vpop.eup %1852 }
 0x2b8   :  { %v930_v58 = vadd.f32 %v2218_v32, %v929_v57 }
 0x2b9   :  { %v1595_v60 = vpop.f32.mrf.mxu0  ;;  %v1855_v61 = vpop.eup %1854 }
 0x2ba   :  { %v941_v62 = vadd.f32 %v1595_v60, %v2218_v32  ;;  %1868 = vtanh.f32 %v930_v58 }
 0x2bb   :  { %v1857_v63 = vpop.eup %1856  ;;  %v932_v1 = vpop.f32.mrf.mxu0 }
 0x2bc   :  { %v1859_v2 = vpop.eup %1858  ;;  %v933_v3 = vadd.f32 %v2218_v32, %v932_v1  ;;  %v986_v4 = vpack.c.bf16 %v1857_v63, %v1853_v59  ;;  %1870 = vtanh.f32 %v941_v62 }
 0x2bd   :  { %v987_v5 = vpack.c.bf16 %v1855_v61, %v1859_v2 }
 0x2be   :  { %1872 = vtanh.f32 %v933_v3  ;;  %1632 = vmatprep.mubr.bf16.mxu1 %v986_v4 }
 0x2bf   :  { %1874 = vtanh.f32 %v938_v0  ;;  %1633 = vmatmul.mubr.bf16.gmra.mxu1 %v987_v5  ;;  %v1861_v6 = vpop.eup %1860 }
 0x2c1   :  { %v1863_v7 = vpop.eup %1862 }
 0x2c3   :  { %v1865_v8 = vpop.eup %1864 }
 0x2c4   :  { %v1867_v9 = vpop.eup %1866  ;;  %v988_v10 = vpack.c.bf16 %v1865_v8, %v1861_v6 }
 0x2c5   :  { %v989_v11 = vpack.c.bf16 %v1863_v7, %v1867_v9 }
 0x2c6   :  { %1636 = vmatprep.mubr.bf16.mxu1 %v988_v10 }
 0x2c7   :  { %1637 = vmatmul.mubr.bf16.gmra.mxu1 %v989_v11  ;;  %v1869_v12 = vpop.eup %1868 }
 0x2c9   :  { %v1871_v13 = vpop.eup %1870 }
 0x2cb   :  { %v1873_v14 = vpop.eup %1872 }
 0x2cc   :  { %v1875_v15 = vpop.eup %1874  ;;  %v990_v32 = vpack.c.bf16 %v1873_v14, %v1869_v12 }
 0x2cd   :  { %v991_v16 = vpack.c.bf16 %v1871_v13, %v1875_v15 }
 0x2ce   :  { %1640 = vmatprep.mubr.bf16.mxu1 %v990_v32 }
 0x2cf   :  { %1641 = vmatmul.mubr.bf16.gmra.mxu1 %v991_v16 }
 0x357   :  { %v1614_v18 = vpop.f32.mrf.mxu0 }
 0x358   :  { %v1106_v19 = vadd.f32 %v1614_v18, %v2255_v17 }
 0x359   :  { %v1097_v20 = vpop.f32.mrf.mxu0 }
 0x35a   :  { %1226 = vst [vmem:[%s2391_s6 + $0x10] sm:$0xff] %v1106_v19  ;;  %v1098_v21 = vadd.f32 %v2255_v17, %v1097_v20 }
 0x35b   :  { %v1615_v22 = vpop.f32.mrf.mxu0 }
 0x35c   :  { %1224 = vst [vmem:[%s2391_s6] sm:$0xff] %v1098_v21  ;;  %v1109_v23 = vadd.f32 %v1615_v22, %v2255_v17 }
 0x35d   :  { %v1100_v24 = vpop.f32.mrf.mxu0 }
 0x35e   :  { %1227 = vst [vmem:[%s2391_s6 + $0x18] sm:$0xff] %v1109_v23  ;;  %v1101_v25 = vadd.f32 %v2255_v17, %v1100_v24 }
 0x35f   :  { %v1618_v42 = vpop.f32.mrf.mxu1 }
 0x360   :  { %1225 = vst [vmem:[%s2391_s6 + $0x8] sm:$0xff] %v1101_v25  ;;  %v1122_v26 = vadd.f32 %v1618_v42, %v2255_v17 }
 0x361   :  { %v1113_v27 = vpop.f32.mrf.mxu1 }
 0x362   :  { %1230 = vst [vmem:[%s2391_s6 + $0x30] sm:$0xff] %v1122_v26  ;;  %v1114_v28 = vadd.f32 %v2255_v17, %v1113_v27 }
 0x363   :  { %v1619_v29 = vpop.f32.mrf.mxu1 }
 0x364   :  { %1228 = vst [vmem:[%s2391_s6 + $0x20] sm:$0xff] %v1114_v28  ;;  %v1125_v30 = vadd.f32 %v1619_v29, %v2255_v17 }
 0x365   :  { %v1116_v31 = vpop.f32.mrf.mxu1 }
 0x366   :  { %1231 = vst [vmem:[%s2391_s6 + $0x38] sm:$0xff] %v1125_v30  ;;  %v1117_v33 = vadd.f32 %v2255_v17, %v1116_v31 }
 0x367   :  { %v1622_v34 = vpop.f32.mrf.mxu1 }
 0x368   :  { %1229 = vst [vmem:[%s2391_s6 + $0x28] sm:$0xff] %v1117_v33  ;;  %v1138_v49 = vadd.f32 %v1622_v34, %v2255_v17 }
 0x369   :  { %v1129_v35 = vpop.f32.mrf.mxu1 }
 0x36a   :  { %1234 = vst [vmem:[%s2391_s6 + $0x50] sm:$0xff] %v1138_v49  ;;  %v1130_v36 = vadd.f32 %v2255_v17, %v1129_v35 }
 0x36b   :  { %v1623_v37 = vpop.f32.mrf.mxu1 }
 0x36c   :  { %1232 = vst [vmem:[%s2391_s6 + $0x40] sm:$0xff] %v1130_v36  ;;  %v1141_v38 = vadd.f32 %v1623_v37, %v2255_v17 }
 0x36d   :  { %v1132_v39 = vpop.f32.mrf.mxu1 }
 0x36e   :  { %1235 = vst [vmem:[%s2391_s6 + $0x58] sm:$0xff] %v1141_v38  ;;  %v1133_v41 = vadd.f32 %v2255_v17, %v1132_v39 }
 0x36f   :  { %v1626_v43 = vpop.f32.mrf.mxu1 }
 0x370   :  { %1233 = vst [vmem:[%s2391_s6 + $0x48] sm:$0xff] %v1133_v41  ;;  %v1154_v44 = vadd.f32 %v1626_v43, %v2255_v17 }
 0x371   :  { %v1145_v45 = vpop.f32.mrf.mxu1 }
 0x372   :  { %1238 = vst [vmem:[%s2391_s6 + $0x70] sm:$0xff] %v1154_v44  ;;  %v1146_v46 = vadd.f32 %v2255_v17, %v1145_v45 }
 0x373   :  { %v1627_v47 = vpop.f32.mrf.mxu1 }
 0x374   :  { %1236 = vst [vmem:[%s2391_s6 + $0x60] sm:$0xff] %v1146_v46  ;;  %v1157_v40 = vadd.f32 %v1627_v47, %v2255_v17 }
 0x375   :  { %v1148_v48 = vpop.f32.mrf.mxu1 }
 0x376   :  { %1239 = vst [vmem:[%s2391_s6 + $0x78] sm:$0xff] %v1157_v40  ;;  %v1149_v50 = vadd.f32 %v2255_v17, %v1148_v48 }
 0x377   :  { %v1630_v51 = vpop.f32.mrf.mxu1 }
 0x378   :  { %1237 = vst [vmem:[%s2391_s6 + $0x68] sm:$0xff] %v1149_v50  ;;  %v1170_v52 = vadd.f32 %v1630_v51, %v2255_v17 }
 0x379   :  { %v1161_v53 = vpop.f32.mrf.mxu1 }
 0x37a   :  { %1242 = vst [vmem:[%s2391_s6 + $0x90] sm:$0xff] %v1170_v52  ;;  %v1162_v54 = vadd.f32 %v2255_v17, %v1161_v53 }
 0x37b   :  { %v1631_v55 = vpop.f32.mrf.mxu1 }
 0x37c   :  { %1240 = vst [vmem:[%s2391_s6 + $0x80] sm:$0xff] %v1162_v54  ;;  %v1173_v56 = vadd.f32 %v1631_v55, %v2255_v17 }
 0x37d   :  { %v1164_v57 = vpop.f32.mrf.mxu1 }
 0x37e   :  { %1243 = vst [vmem:[%s2391_s6 + $0x98] sm:$0xff] %v1173_v56  ;;  %v1165_v58 = vadd.f32 %v2255_v17, %v1164_v57 }
 0x37f   :  { %v1634_v59 = vpop.f32.mrf.mxu1 }
 0x380   :  { %1241 = vst [vmem:[%s2391_s6 + $0x88] sm:$0xff] %v1165_v58  ;;  %v1186_v60 = vadd.f32 %v1634_v59, %v2255_v17 }
 0x381   :  { %v1177_v61 = vpop.f32.mrf.mxu1 }
 0x382   :  { %1246 = vst [vmem:[%s2391_s6 + $0xb0] sm:$0xff] %v1186_v60  ;;  %v1178_v62 = vadd.f32 %v2255_v17, %v1177_v61 }
 0x383   :  { %v1635_v63 = vpop.f32.mrf.mxu1 }
 0x384   :  { %1244 = vst [vmem:[%s2391_s6 + $0xa0] sm:$0xff] %v1178_v62  ;;  %v1189_v0 = vadd.f32 %v1635_v63, %v2255_v17 }
 0x385   :  { %v1180_v1 = vpop.f32.mrf.mxu1 }
 0x386   :  { %1247 = vst [vmem:[%s2391_s6 + $0xb8] sm:$0xff] %v1189_v0  ;;  %v1181_v2 = vadd.f32 %v2255_v17, %v1180_v1 }
 0x387   :  { %v1638_v3 = vpop.f32.mrf.mxu1 }
 0x388   :  { %1245 = vst [vmem:[%s2391_s6 + $0xa8] sm:$0xff] %v1181_v2  ;;  %v1202_v4 = vadd.f32 %v1638_v3, %v2255_v17 }
 0x389   :  { %v1193_v5 = vpop.f32.mrf.mxu1 }
 0x38a   :  { %1250 = vst [vmem:[%s2391_s6 + $0xd0] sm:$0xff] %v1202_v4  ;;  %v1194_v6 = vadd.f32 %v2255_v17, %v1193_v5 }
 0x38b   :  { %v1639_v7 = vpop.f32.mrf.mxu1 }
 0x38c   :  { %1248 = vst [vmem:[%s2391_s6 + $0xc0] sm:$0xff] %v1194_v6  ;;  %v1205_v8 = vadd.f32 %v1639_v7, %v2255_v17 }
 0x38d   :  { %v1196_v9 = vpop.f32.mrf.mxu1 }
 0x38e   :  { %1251 = vst [vmem:[%s2391_s6 + $0xd8] sm:$0xff] %v1205_v8  ;;  %v1197_v10 = vadd.f32 %v2255_v17, %v1196_v9 }
 0x38f   :  { %v1642_v11 = vpop.f32.mrf.mxu1 }
 0x390   :  { %1249 = vst [vmem:[%s2391_s6 + $0xc8] sm:$0xff] %v1197_v10  ;;  %v1218_v12 = vadd.f32 %v1642_v11, %v2255_v17 }
 0x391   :  { %v1209_v13 = vpop.f32.mrf.mxu1 }
 0x392   :  { %1254 = vst [vmem:[%s2391_s6 + $0xf0] sm:$0xff] %v1218_v12  ;;  %v1210_v14 = vadd.f32 %v2255_v17, %v1209_v13 }
 0x393   :  { %v1643_v15 = vpop.f32.mrf.mxu1 }
 0x394   :  { %1252 = vst [vmem:[%s2391_s6 + $0xe0] sm:$0xff] %v1210_v14  ;;  %v1221_v32 = vadd.f32 %v1643_v15, %v2255_v17 }
 0x395   :  { %v1212_v16 = vpop.f32.mrf.mxu1 }
 0x396   :  { %1255 = vst [vmem:[%s2391_s6 + $0xf8] sm:$0xff] %v1221_v32  ;;  %v1213_v18 = vadd.f32 %v2255_v17, %v1212_v16 }
 0x398   :  { %1253 = vst [vmem:[%s2391_s6 + $0xe8] sm:$0xff] %v1213_v18 }

</bundles_post_ra>
